<compile_context>
chip_gen: v5e
topology: v5e:2x2
jax: 0.10.0
libtpu: 0.0.40
codegen_flags: <defaults>
</compile_context>

<pallas_src>
import math
import functools

import jax
import jax.numpy as jnp
from jax.experimental import pallas as pl
from jax.experimental.pallas import tpu as pltpu

LANE = 128      # lane width (last dim alignment)
SUBLANE = 8     # sublane width (second-to-last dim alignment)


def _round_up(x, m):
    return ((x + m - 1) // m) * m


# --------------------------------------------------------------------------
# Parameter init / re-layout
# --------------------------------------------------------------------------
def init_params(key, input_size, hidden_size):
    """U(-std, std) init matching reset_parameters; torch Linear layout."""
    std = 1.0 / math.sqrt(hidden_size)
    k1, k2, k3, k4 = jax.random.split(key, 4)
    w_ih = jax.random.uniform(k1, (4 * hidden_size, input_size),
                              jnp.float32, -std, std)
    w_hh = jax.random.uniform(k2, (4 * hidden_size, hidden_size),
                              jnp.float32, -std, std)
    b_ih = jax.random.uniform(k3, (4 * hidden_size,), jnp.float32, -std, std)
    b_hh = jax.random.uniform(k4, (4 * hidden_size,), jnp.float32, -std, std)
    return w_ih, w_hh, b_ih, b_hh


def prepare_params(raw, input_size, hidden_size):
    """Re-layout to the lane-aligned kernel format (done once, outside the step).

    - transpose so the kernel does activations @ W (row-major MXU dot),
    - pad each of the 4 gate blocks to Hp (multiple of 128) columns so gate
      slices are whole vregs and output stores are unmasked,
    - stack [Wih_pad ; Whh_pad] -> one (Dp+Hp, 4*Hp) matrix (single MXU push),
    - fold b_ih + b_hh into one (1, 4*Hp) bias row.
    Padded rows/columns are zero, so they contribute nothing and the padded
    state columns stay exactly zero through the recurrence.
    """
    w_ih, w_hh, b_ih, b_hh = raw
    H = hidden_size
    Dp = _round_up(input_size, LANE)
    Hp = _round_up(H, LANE)

    w = jnp.zeros((Dp + Hp, 4 * Hp), jnp.float32)
    b = jnp.zeros((1, 4 * Hp), jnp.float32)
    for g in range(4):
        w = w.at[:input_size, g * Hp:g * Hp + H].set(w_ih[g * H:(g + 1) * H, :].T)
        w = w.at[Dp:Dp + H, g * Hp:g * Hp + H].set(w_hh[g * H:(g + 1) * H, :].T)
        b = b.at[0, g * Hp:g * Hp + H].set(b_ih[g * H:(g + 1) * H] +
                                           b_hh[g * H:(g + 1) * H])
    meta = (input_size, hidden_size, Dp, Hp)
    return w, b, meta


# --------------------------------------------------------------------------
# Single-step cell kernel (matches LSTM.forward semantics)
# --------------------------------------------------------------------------
def lstm_cell_kernel(xh_ref, w_ref, b_ref, c_ref, h_out_ref, c_out_ref, *, hp):
    """One LSTM step, fully VMEM-resident.

    xh: (Bp, Dp+Hp) = [x | h],  w: (Dp+Hp, 4Hp) = [Wih ; Whh],  b: (1, 4Hp)
    Single fused MXU matmul; gate slices are whole 128-lane blocks.
    """
    preact = jnp.dot(xh_ref[...], w_ref[...],
                     preferred_element_type=jnp.float32) + b_ref[...]
    i_t = jax.nn.sigmoid(preact[:, 0 * hp:1 * hp])
    f_t = jax.nn.sigmoid(preact[:, 1 * hp:2 * hp])
    o_t = jax.nn.sigmoid(preact[:, 2 * hp:3 * hp])
    g_t = jnp.tanh(preact[:, 3 * hp:4 * hp])
    c_t = c_ref[...] * f_t + i_t * g_t
    h_t = o_t * jnp.tanh(c_t)
    h_out_ref[...] = h_t.astype(h_out_ref.dtype)
    c_out_ref[...] = c_t.astype(c_out_ref.dtype)


def lstm_forward(x, hidden, params):
    """Mirrors LSTM.forward: returns (h_t, (h_t, c_t)) with shape (1, B, H)."""
    w, b, (din, H, Dp, Hp) = params
    h, c = hidden
    B = x.shape[1]
    Bp = _round_up(B, SUBLANE)

    x2 = x.reshape(B, -1)
    h2 = h.reshape(B, -1)
    c2 = c.reshape(B, -1)

    # Pack [x | h] into one lane-aligned slab; zero padding is inert.
    xh = jnp.zeros((Bp, Dp + Hp), jnp.float32)
    xh = xh.at[:B, :din].set(x2).at[:B, Dp:Dp + H].set(h2)
    c_pad = jnp.zeros((Bp, Hp), jnp.float32).at[:B, :H].set(c2)

    full = lambda shape: pl.BlockSpec(shape, lambda: tuple(0 for _ in shape))
    kernel = functools.partial(lstm_cell_kernel, hp=Hp)

    h_t, c_t = pl.pallas_call(
        kernel,
        out_shape=(jax.ShapeDtypeStruct((Bp, Hp), jnp.float32),
                   jax.ShapeDtypeStruct((Bp, Hp), jnp.float32)),
        grid=(),
        in_specs=[full(xh.shape), full(w.shape), full(b.shape),
                  full(c_pad.shape)],
        out_specs=(full((Bp, Hp)), full((Bp, Hp))),
    )(xh, w, b, c_pad)

    h_t = h_t[:B, :H].reshape(1, B, H)
    c_t = c_t[:B, :H].reshape(1, B, H)
    return h_t, (h_t, c_t)


# --------------------------------------------------------------------------
# Fused multi-step recurrence: one pallas_call for the whole sequence.
# Equivalent to calling LSTM.forward T times in a Python loop, but with
#   * X @ Wih + b hoisted out as one big matmul,
#   * Whh VMEM-resident across all steps (index_map -> (0, 0)),
#   * h/c carried in VMEM scratch across grid iterations,
#   * per-step lane-dense writes of h_t into (T, Bp, Hp).
# --------------------------------------------------------------------------
def lstm_seq_kernel(xproj_ref, whh_ref, h0_ref, c0_ref,
                    hseq_ref, hfin_ref, cfin_ref, h_sc, c_sc, *, hp):
    t = pl.program_id(0)

    @pl.when(t == 0)
    def _():
        h_sc[...] = h0_ref[...]
        c_sc[...] = c0_ref[...]

    preact = xproj_ref[0] + jnp.dot(h_sc[...], whh_ref[...],
                                    preferred_element_type=jnp.float32)
    i_t = jax.nn.sigmoid(preact[:, 0 * hp:1 * hp])
    f_t = jax.nn.sigmoid(preact[:, 1 * hp:2 * hp])
    o_t = jax.nn.sigmoid(preact[:, 2 * hp:3 * hp])
    g_t = jnp.tanh(preact[:, 3 * hp:4 * hp])
    c_t = c_sc[...] * f_t + i_t * g_t
    h_t = o_t * jnp.tanh(c_t)

    h_sc[...] = h_t
    c_sc[...] = c_t
    hseq_ref[0] = h_t
    hfin_ref[...] = h_t    # resident output block; HBM writeback at the end
    cfin_ref[...] = c_t


def lstm_sequence_forward(xs, hidden, params):
    """Run the cell over xs: (T, B, Din). Returns (h_seq (T,B,H), (h_T, c_T))
    with h_T/c_T shaped (1, B, H) like the module's hidden state."""
    w, b, (din, H, Dp, Hp) = params
    h0, c0 = hidden
    T, B, _ = xs.shape
    Bp = _round_up(B, SUBLANE)

    # Hoisted input projection: one large (T*B, Din) @ (Din, 4Hp) matmul.
    xs_pad = jnp.zeros((T, Bp, din), jnp.float32).at[:, :B, :].set(xs)
    xproj = jnp.einsum("tbd,dg->tbg", xs_pad, w[:din, :],
                       preferred_element_type=jnp.float32) + b  # (T, Bp, 4Hp)

    whh = w[Dp:, :]                                             # (Hp, 4Hp)
    h0p = jnp.zeros((Bp, Hp), jnp.float32).at[:B, :H].set(h0.reshape(B, -1))
    c0p = jnp.zeros((Bp, Hp), jnp.float32).at[:B, :H].set(c0.reshape(B, -1))

    kernel = functools.partial(lstm_seq_kernel, hp=Hp)
    h_seq, h_fin, c_fin = pl.pallas_call(
        kernel,
        out_shape=(jax.ShapeDtypeStruct((T, Bp, Hp), jnp.float32),
                   jax.ShapeDtypeStruct((Bp, Hp), jnp.float32),
                   jax.ShapeDtypeStruct((Bp, Hp), jnp.float32)),
        grid=(T,),
        in_specs=[
            pl.BlockSpec((1, Bp, 4 * Hp), lambda t: (t, 0, 0)),   # xproj[t]
            pl.BlockSpec((Hp, 4 * Hp), lambda t: (0, 0)),         # Whh resident
            pl.BlockSpec((Bp, Hp), lambda t: (0, 0)),             # h0
            pl.BlockSpec((Bp, Hp), lambda t: (0, 0)),             # c0
        ],
        out_specs=(
            pl.BlockSpec((1, Bp, Hp), lambda t: (t, 0, 0)),       # h per step
            pl.BlockSpec((Bp, Hp), lambda t: (0, 0)),             # final h
            pl.BlockSpec((Bp, Hp), lambda t: (0, 0)),             # final c
        ),
        scratch_shapes=[pltpu.VMEM((Bp, Hp), jnp.float32),
                        pltpu.VMEM((Bp, Hp), jnp.float32)],
        compiler_params=pltpu.CompilerParams(
            dimension_semantics=("arbitrary",)),
    )(xproj, whh, h0p, c0p)

    h_seq = h_seq[:, :B, :H]
    h_T = h_fin[:B, :H].reshape(1, B, H)
    c_T = c_fin[:B, :H].reshape(1, B, H)
    return h_seq, (h_T, c_T)


# --------------------------------------------------------------------------
if __name__ == "__main__":
    input_size = 32
    hidden_size = 32
    batch = 8
    seq_len = 6

    key = jax.random.PRNGKey(0)
    kp, kx, kh, kc, ks = jax.random.split(key, 5)

    raw = init_params(kp, input_size, hidden_size)
    params = prepare_params(raw, input_size, hidden_size)

    x = jax.random.normal(kx, (1, batch, input_size), jnp.float32)
    h0 = jax.random.normal(kh, (1, batch, hidden_size), jnp.float32)
    c0 = jax.random.normal(kc, (1, batch, hidden_size), jnp.float32)

    # Pure-JAX reference of the module's math (torch-layout weights).
    def ref_step(x2, h2, c2):
        w_ih, w_hh, b_ih, b_hh = raw
        H = hidden_size
        preact = x2 @ w_ih.T + h2 @ w_hh.T + b_ih + b_hh
        gates = jax.nn.sigmoid(preact[:, :3 * H])
        g = jnp.tanh(preact[:, 3 * H:])
        i = gates[:, :H]
        f = gates[:, H:2 * H]
        o = gates[:, 2 * H:3 * H]
        c_n = c2 * f + i * g
        h_n = o * jnp.tanh(c_n)
        return h_n, c_n

    # ---- single-step forward (matches LSTM.forward) ----
    h_t, (h_t2, c_t) = lstm_forward(x, (h0, c0), params)
    jax.block_until_ready((h_t, c_t))

    h_ref, c_ref = ref_step(x.reshape(batch, -1),
                            h0.reshape(batch, -1),
                            c0.reshape(batch, -1))
    assert jnp.allclose(h_t.reshape(batch, -1), h_ref, atol=1e-4), "h mismatch"
    assert jnp.allclose(c_t.reshape(batch, -1), c_ref, atol=1e-4), "c mismatch"

    # ---- fused multi-step recurrence (one pallas_call for T steps) ----
    xs = jax.random.normal(ks, (seq_len, batch, input_size), jnp.float32)
    h_seq, (h_T, c_T) = lstm_sequence_forward(xs, (h0, c0), params)
    jax.block_until_ready((h_seq, c_T))

    h2, c2 = h0.reshape(batch, -1), c0.reshape(batch, -1)
    for t in range(seq_len):
        h2, c2 = ref_step(xs[t], h2, c2)
        assert jnp.allclose(h_seq[t], h2, atol=1e-4), f"h_seq mismatch @ t={t}"
    assert jnp.allclose(h_T.reshape(batch, -1), h2, atol=1e-4), "h_T mismatch"
    assert jnp.allclose(c_T.reshape(batch, -1), c2, atol=1e-4), "c_T mismatch"

    print("KERNEL_OK")
</pallas_src>

<mosaic_0001>
module attributes {stable_mosaic.version = 11 : i64} {
  func.func @lstm_cell_kernel(%arg0: memref<8x256xf32, #tpu.memory_space<vmem>>, %arg1: memref<256x512xf32, #tpu.memory_space<vmem>>, %arg2: memref<1x512xf32, #tpu.memory_space<vmem>>, %arg3: memref<8x128xf32, #tpu.memory_space<vmem>>, %arg4: memref<8x128xf32, #tpu.memory_space<vmem>>, %arg5: memref<8x128xf32, #tpu.memory_space<vmem>>) attributes {dimension_semantics = [], scalar_prefetch = 0 : i64, scratch_operands = 0 : i64, tpu.core_type = #tpu.core_type<tc>} {
    %c0 = arith.constant 0 : index
    %c0_0 = arith.constant 0 : index
    %0 = vector.load %arg0[%c0, %c0_0] : memref<8x256xf32, #tpu.memory_space<vmem>>, vector<8x256xf32>
    %c0_1 = arith.constant 0 : index
    %c0_2 = arith.constant 0 : index
    %1 = vector.load %arg1[%c0_1, %c0_2] : memref<256x512xf32, #tpu.memory_space<vmem>>, vector<256x512xf32>
    %cst = arith.constant dense<0.000000e+00> : vector<8x512xf32>
    %2 = tpu.matmul %0, %1, %cst {dimension_numbers = #tpu.dot_dimension_numbers<[1], [0], [0], [1], [0, 0, 1, 1], [], []>} : vector<8x256xf32>, vector<256x512xf32>, vector<8x512xf32> -> vector<8x512xf32>
    %c0_3 = arith.constant 0 : index
    %c0_4 = arith.constant 0 : index
    %3 = vector.load %arg2[%c0_3, %c0_4] : memref<1x512xf32, #tpu.memory_space<vmem>>, vector<1x512xf32>
    %4 = vector.broadcast %3 : vector<1x512xf32> to vector<8x512xf32>
    %5 = arith.addf %2, %4 : vector<8x512xf32>
    %6 = vector.extract_strided_slice %5 {offsets = [0, 0], sizes = [8, 128], strides = [1, 1]} : vector<8x512xf32> to vector<8x128xf32>
    %7 = arith.negf %6 : vector<8x128xf32>
    %8 = math.exp %7 : vector<8x128xf32>
    %cst_5 = arith.constant 1.000000e+00 : f32
    %9 = vector.broadcast %cst_5 : f32 to vector<8x128xf32>
    %10 = arith.addf %9, %8 : vector<8x128xf32>
    %11 = arith.divf %9, %10 : vector<8x128xf32>
    %12 = vector.extract_strided_slice %5 {offsets = [0, 128], sizes = [8, 128], strides = [1, 1]} : vector<8x512xf32> to vector<8x128xf32>
    %13 = arith.negf %12 : vector<8x128xf32>
    %14 = math.exp %13 : vector<8x128xf32>
    %cst_6 = arith.constant 1.000000e+00 : f32
    %15 = vector.broadcast %cst_6 : f32 to vector<8x128xf32>
    %16 = arith.addf %15, %14 : vector<8x128xf32>
    %17 = arith.divf %15, %16 : vector<8x128xf32>
    %18 = vector.extract_strided_slice %5 {offsets = [0, 256], sizes = [8, 128], strides = [1, 1]} : vector<8x512xf32> to vector<8x128xf32>
    %19 = arith.negf %18 : vector<8x128xf32>
    %20 = math.exp %19 : vector<8x128xf32>
    %cst_7 = arith.constant 1.000000e+00 : f32
    %21 = vector.broadcast %cst_7 : f32 to vector<8x128xf32>
    %22 = arith.addf %21, %20 : vector<8x128xf32>
    %23 = arith.divf %21, %22 : vector<8x128xf32>
    %24 = vector.extract_strided_slice %5 {offsets = [0, 384], sizes = [8, 128], strides = [1, 1]} : vector<8x512xf32> to vector<8x128xf32>
    %25 = math.tanh %24 : vector<8x128xf32>
    %c0_8 = arith.constant 0 : index
    %c0_9 = arith.constant 0 : index
    %26 = vector.load %arg3[%c0_8, %c0_9] : memref<8x128xf32, #tpu.memory_space<vmem>>, vector<8x128xf32>
    %27 = arith.mulf %26, %17 : vector<8x128xf32>
    %28 = arith.mulf %11, %25 : vector<8x128xf32>
    %29 = arith.addf %27, %28 : vector<8x128xf32>
    %30 = math.tanh %29 : vector<8x128xf32>
    %31 = arith.mulf %23, %30 : vector<8x128xf32>
    %c0_10 = arith.constant 0 : index
    %c0_11 = arith.constant 0 : index
    %32 = vector.load %arg4[%c0_10, %c0_11] : memref<8x128xf32, #tpu.memory_space<vmem>>, vector<8x128xf32>
    tpu.vector_store %arg4[%c0_10, %c0_11], %31 {strides = array<i32>} : memref<8x128xf32, #tpu.memory_space<vmem>>, vector<8x128xf32>,
    %c0_12 = arith.constant 0 : index
    %c0_13 = arith.constant 0 : index
    %33 = vector.load %arg5[%c0_12, %c0_13] : memref<8x128xf32, #tpu.memory_space<vmem>>, vector<8x128xf32>
    tpu.vector_store %arg5[%c0_12, %c0_13], %29 {strides = array<i32>} : memref<8x128xf32, #tpu.memory_space<vmem>>, vector<8x128xf32>,
    return
  }
}

</mosaic_0001>

<bundles_post_ra>
// kernel: tpu_custom_call.1
= control target key start
LH: loop header
LB: loop body
LE: loop exit
PB: predicated region body
PF: predicated region fallthrough
CT: control target
= control target key end

     0   :  { %11 = vsyncpa [#allocation3], 0  ;;  %s734_s0 = inlined_call_operand.hbm [shape: f32[8,256], index: 0, kind: input, shape index: {}]   ;;  %s735_s1 = inlined_call_operand.hbm [shape: f32[256,512], index: 1, kind: input, shape index: {}]   ;;  %s736_s2 = inlined_call_operand.hbm [shape: f32[1,512], index: 2, kind: input, shape index: {}]   ;;  %s737_s3 = inlined_call_operand.hbm [shape: f32[8,128], index: 3, kind: input, shape index: {}]   ;;  %s738_s4 = inlined_call_operand.hbm [shape: f32[8,128], index: 4, kind: output, shape index: {0}]   ;;  %s739_s5 = inlined_call_operand.hbm [shape: f32[8,128], index: 5, kind: output, shape index: {1}]  }
   0x1   :  { %12 = vsyncpa [#allocation6], 0 }
   0x2   :  { %13 = vsyncpa [#allocation9], 0 }
   0x3   :  { %14 = vsyncpa [#allocation4], 0  ;;  %s31_s20 = sshll.u32 %s735_s1, 4  ;;  %s32_s20 = int_to_ptr.hbm [resolvable:$true] %s31_s20 }
   0x4   :  { %15 = vsyncpa [#allocation12], 0  ;;  %s660_s21 = smov [#allocation5]   ;;  %s21_s25 = sshll.u32 %s734_s0, 4  ;;  %s22_s25 = int_to_ptr.hbm [resolvable:$true] %s21_s25 }
   0x5   :  { %s33_s22 = sshll.u32 %s660_s21, 4  ;;  %s661_s26 = smov 512   ;;  %s34_s22 = int_to_ptr.vmem [resolvable:$true] %s33_s22 }
   0x6   :  { %s662_s27 = smov 32   ;;  %s663_s28 = smov [#allocation2]  }
   0x7   :  { %39 = dma.hbm_to_vmem [thread:$0]  %s32_s20, 16384, %s34_s22, [#allocation6], %s661_s26, %s661_s26, %s662_s27  }
   0x8   :  { %s23_s29 = sshll.u32 %s663_s28, 4  ;;  %s45_s7 = sshll.u32 %s736_s2, 4  ;;  %s24_s29 = int_to_ptr.vmem [resolvable:$true] %s23_s29  ;;  %s46_s7 = int_to_ptr.hbm [resolvable:$true] %s45_s7 }
   0x9   :  { %26 = dma.hbm_to_vmem [thread:$0]  %s22_s25, 256, %s24_s29, [#allocation3]  }
   0xa   :  { %s56_s9 = sshll.u32 %s737_s3, 4  ;;  %s664_s10 = smov [#allocation7]   ;;  %s57_s9 = int_to_ptr.hbm [resolvable:$true] %s56_s9 }
   0xb   :  { %s47_s11 = sshll.u32 %s664_s10, 4  ;;  %s665_s0 = smov [#allocation8]   ;;  %s48_s11 = int_to_ptr.vmem [resolvable:$true] %s47_s11 }
   0xc   :  { %50 = dma.hbm_to_vmem [thread:$0]  %s46_s7, 64, %s48_s11, [#allocation6]  }
   0xd   :  { %s58_s12 = sshll.u32 %s665_s0, 4  ;;  %s59_s12 = int_to_ptr.vmem [resolvable:$true] %s58_s12 }
   0xe   :  { %61 = dma.hbm_to_vmem [thread:$0]  %s57_s9, 128, %s59_s12, [#allocation9]  }
   0xf   :  { %650 = dma.done.wait [#allocation3], 256  }
  0x10   :  { %651 = vsyncadd [#allocation3], 4294967040 }
  0x11   :  { %652 = dma.done.wait [#allocation6], 16448  }
  0x12   :  { %653 = vsyncadd [#allocation6], 4294950848 }
  0x13   :  { %654 = dma.done.wait [#allocation9], 128  }
  0x14   :  { %655 = vsyncadd [#allocation9], 4294967168  ;;  %v140_v0 = vld [vmem:[#allocation5 + $0x1e0] sm:$0xff]  ;;  %v141_v1 = vld [vmem:[#allocation5 + $0x1e8] sm:$0xff]  ;;  %s666_s2 = smov [#allocation11]   ;;  %s462_s15 = sshll.u32 %s739_s5, 4  ;;  %s463_s15 = int_to_ptr.hbm [resolvable:$true] %s462_s15 }
  0x15   :  { %v136_v2 = vld [vmem:[#allocation5 + $0x1c0] sm:$0xff]  ;;  %218 = vmatpush.msra.mxu0 %v140_v0  ;;  %258 = vmatpush.msra.mxu2 %v141_v1  ;;  %v137_v4 = vld [vmem:[#allocation5 + $0x1c8] sm:$0xff]  ;;  %v142_v62 = vld [vmem:[#allocation5 + $0x1f0] sm:$0xff]  ;;  %s460_s3 = sshll.u32 %s666_s2, 4  ;;  %s667_s5 = smov [#allocation10]   ;;  %s461_s3 = int_to_ptr.vmem [resolvable:$true] %s460_s3 }
  0x16   :  { %v204_v3 = vld [vmem:[#allocation5 + $0x3e0] sm:$0xff]  ;;  %v205_v5 = vld [vmem:[#allocation5 + $0x3e8] sm:$0xff]  ;;  %v143_v63 = vld [vmem:[#allocation5 + $0x1f8] sm:$0xff]  ;;  %s449_s16 = sshll.u32 %s667_s5, 4  ;;  %s451_s19 = sshll.u32 %s738_s4, 4  ;;  %s450_s16 = int_to_ptr.vmem [resolvable:$true] %s449_s16  ;;  %s452_s19 = int_to_ptr.hbm [resolvable:$true] %s451_s19 }
  0x17   :  { %238 = vmatpush.msra.mxu1 %v204_v3  ;;  %278 = vmatpush.msra.mxu3 %v205_v5  ;;  %v132_v6 = vld [vmem:[#allocation5 + $0x1a0] sm:$0xff]  ;;  %v133_v8 = vld [vmem:[#allocation5 + $0x1a8] sm:$0xff]  ;;  %v710_v1 = vld [vmem:[#allocation2] sm:$0xff] }
  0x18   :  { %v200_v7 = vld [vmem:[#allocation5 + $0x3c0] sm:$0xff]  ;;  %219 = vmatpush.msra.mxu0 %v136_v2  ;;  %259 = vmatpush.msra.mxu2 %v137_v4  ;;  %v201_v9 = vld [vmem:[#allocation5 + $0x3c8] sm:$0xff]  ;;  %v138_v3 = vld [vmem:[#allocation5 + $0x1d0] sm:$0xff] }
  0x19   :  { %v196_v10 = vld [vmem:[#allocation5 + $0x3a0] sm:$0xff]  ;;  %239 = vmatpush.msra.mxu1 %v200_v7  ;;  %279 = vmatpush.msra.mxu3 %v201_v9  ;;  %v129_v12 = vld [vmem:[#allocation5 + $0x188] sm:$0xff]  ;;  %v206_v4 = vld [vmem:[#allocation5 + $0x3f0] sm:$0xff] }
  0x1a   :  { %v128_v11 = vld [vmem:[#allocation5 + $0x180] sm:$0xff]  ;;  %v197_v13 = vld [vmem:[#allocation5 + $0x3a8] sm:$0xff]  ;;  %220 = vmatpush.msra.mxu0 %v132_v6  ;;  %260 = vmatpush.msra.mxu2 %v133_v8  ;;  %v139_v5 = vld [vmem:[#allocation5 + $0x1d8] sm:$0xff] }
  0x1b   :  { %v192_v14 = vld [vmem:[#allocation5 + $0x380] sm:$0xff]  ;;  %v193_v15 = vld [vmem:[#allocation5 + $0x388] sm:$0xff]  ;;  %240 = vmatpush.msra.mxu1 %v196_v10  ;;  %280 = vmatpush.msra.mxu3 %v197_v13  ;;  %v207_v6 = vld [vmem:[#allocation5 + $0x3f8] sm:$0xff] }
  0x1c   :  { %v124_v16 = vld [vmem:[#allocation5 + $0x160] sm:$0xff]  ;;  %v125_v17 = vld [vmem:[#allocation5 + $0x168] sm:$0xff]  ;;  %221 = vmatpush.msra.mxu0 %v128_v11  ;;  %261 = vmatpush.msra.mxu2 %v129_v12  ;;  %v134_v7 = vld [vmem:[#allocation5 + $0x1b0] sm:$0xff] }
  0x1d   :  { %v188_v18 = vld [vmem:[#allocation5 + $0x360] sm:$0xff]  ;;  %v189_v19 = vld [vmem:[#allocation5 + $0x368] sm:$0xff]  ;;  %241 = vmatpush.msra.mxu1 %v192_v14  ;;  %281 = vmatpush.msra.mxu3 %v193_v15  ;;  %v713_v8 = vld [vmem:[#allocation2 + $0x8] sm:$0xff] }
  0x1e   :  { %v120_v20 = vld [vmem:[#allocation5 + $0x140] sm:$0xff]  ;;  %v121_v21 = vld [vmem:[#allocation5 + $0x148] sm:$0xff]  ;;  %222 = vmatpush.msra.mxu0 %v124_v16  ;;  %262 = vmatpush.msra.mxu2 %v125_v17  ;;  %v202_v9 = vld [vmem:[#allocation5 + $0x3d0] sm:$0xff] }
  0x1f   :  { %v184_v22 = vld [vmem:[#allocation5 + $0x340] sm:$0xff]  ;;  %v185_v23 = vld [vmem:[#allocation5 + $0x348] sm:$0xff]  ;;  %242 = vmatpush.msra.mxu1 %v188_v18  ;;  %282 = vmatpush.msra.mxu3 %v189_v19  ;;  %v135_v10 = vld [vmem:[#allocation5 + $0x1b8] sm:$0xff] }
  0x20   :  { %v116_v24 = vld [vmem:[#allocation5 + $0x120] sm:$0xff]  ;;  %v117_v25 = vld [vmem:[#allocation5 + $0x128] sm:$0xff]  ;;  %223 = vmatpush.msra.mxu0 %v120_v20  ;;  %263 = vmatpush.msra.mxu2 %v121_v21  ;;  %v203_v11 = vld [vmem:[#allocation5 + $0x3d8] sm:$0xff] }
  0x21   :  { %v180_v26 = vld [vmem:[#allocation5 + $0x320] sm:$0xff]  ;;  %v181_v27 = vld [vmem:[#allocation5 + $0x328] sm:$0xff]  ;;  %243 = vmatpush.msra.mxu1 %v184_v22  ;;  %283 = vmatpush.msra.mxu3 %v185_v23  ;;  %v130_v12 = vld [vmem:[#allocation5 + $0x190] sm:$0xff] }
  0x22   :  { %v112_v28 = vld [vmem:[#allocation5 + $0x100] sm:$0xff]  ;;  %v113_v29 = vld [vmem:[#allocation5 + $0x108] sm:$0xff]  ;;  %224 = vmatpush.msra.mxu0 %v116_v24  ;;  %264 = vmatpush.msra.mxu2 %v117_v25  ;;  %v198_v13 = vld [vmem:[#allocation5 + $0x3b0] sm:$0xff] }
  0x23   :  { %v176_v30 = vld [vmem:[#allocation5 + $0x300] sm:$0xff]  ;;  %v177_v31 = vld [vmem:[#allocation5 + $0x308] sm:$0xff]  ;;  %244 = vmatpush.msra.mxu1 %v180_v26  ;;  %284 = vmatpush.msra.mxu3 %v181_v27  ;;  %v131_v14 = vld [vmem:[#allocation5 + $0x198] sm:$0xff] }
  0x24   :  { %v108_v32 = vld [vmem:[#allocation5 + $0xe0] sm:$0xff]  ;;  %v109_v33 = vld [vmem:[#allocation5 + $0xe8] sm:$0xff]  ;;  %225 = vmatpush.msra.mxu0 %v112_v28  ;;  %265 = vmatpush.msra.mxu2 %v113_v29  ;;  %v199_v15 = vld [vmem:[#allocation5 + $0x3b8] sm:$0xff] }
  0x25   :  { %v172_v34 = vld [vmem:[#allocation5 + $0x2e0] sm:$0xff]  ;;  %v173_v35 = vld [vmem:[#allocation5 + $0x2e8] sm:$0xff]  ;;  %245 = vmatpush.msra.mxu1 %v176_v30  ;;  %285 = vmatpush.msra.mxu3 %v177_v31  ;;  %v194_v16 = vld [vmem:[#allocation5 + $0x390] sm:$0xff] }
  0x26   :  { %v104_v36 = vld [vmem:[#allocation5 + $0xc0] sm:$0xff]  ;;  %v105_v37 = vld [vmem:[#allocation5 + $0xc8] sm:$0xff]  ;;  %226 = vmatpush.msra.mxu0 %v108_v32  ;;  %266 = vmatpush.msra.mxu2 %v109_v33  ;;  %v126_v17 = vld [vmem:[#allocation5 + $0x170] sm:$0xff] }
  0x27   :  { %v168_v38 = vld [vmem:[#allocation5 + $0x2c0] sm:$0xff]  ;;  %v169_v39 = vld [vmem:[#allocation5 + $0x2c8] sm:$0xff]  ;;  %246 = vmatpush.msra.mxu1 %v172_v34  ;;  %286 = vmatpush.msra.mxu3 %v173_v35  ;;  %v127_v18 = vld [vmem:[#allocation5 + $0x178] sm:$0xff] }
  0x28   :  { %v100_v40 = vld [vmem:[#allocation5 + $0xa0] sm:$0xff]  ;;  %v101_v41 = vld [vmem:[#allocation5 + $0xa8] sm:$0xff]  ;;  %227 = vmatpush.msra.mxu0 %v104_v36  ;;  %267 = vmatpush.msra.mxu2 %v105_v37  ;;  %v195_v19 = vld [vmem:[#allocation5 + $0x398] sm:$0xff] }
  0x29   :  { %v164_v42 = vld [vmem:[#allocation5 + $0x2a0] sm:$0xff]  ;;  %v165_v43 = vld [vmem:[#allocation5 + $0x2a8] sm:$0xff]  ;;  %247 = vmatpush.msra.mxu1 %v168_v38  ;;  %287 = vmatpush.msra.mxu3 %v169_v39  ;;  %v122_v20 = vld [vmem:[#allocation5 + $0x150] sm:$0xff] }
  0x2a   :  { %v96_v44 = vld [vmem:[#allocation5 + $0x80] sm:$0xff]  ;;  %v97_v45 = vld [vmem:[#allocation5 + $0x88] sm:$0xff]  ;;  %228 = vmatpush.msra.mxu0 %v100_v40  ;;  %268 = vmatpush.msra.mxu2 %v101_v41  ;;  %v190_v21 = vld [vmem:[#allocation5 + $0x370] sm:$0xff] }
  0x2b   :  { %v160_v46 = vld [vmem:[#allocation5 + $0x280] sm:$0xff]  ;;  %v161_v47 = vld [vmem:[#allocation5 + $0x288] sm:$0xff]  ;;  %248 = vmatpush.msra.mxu1 %v164_v42  ;;  %288 = vmatpush.msra.mxu3 %v165_v43  ;;  %v123_v22 = vld [vmem:[#allocation5 + $0x158] sm:$0xff] }
  0x2c   :  { %v92_v48 = vld [vmem:[#allocation5 + $0x60] sm:$0xff]  ;;  %v93_v49 = vld [vmem:[#allocation5 + $0x68] sm:$0xff]  ;;  %229 = vmatpush.msra.mxu0 %v96_v44  ;;  %269 = vmatpush.msra.mxu2 %v97_v45  ;;  %v191_v23 = vld [vmem:[#allocation5 + $0x378] sm:$0xff] }
  0x2d   :  { %v156_v50 = vld [vmem:[#allocation5 + $0x260] sm:$0xff]  ;;  %v157_v51 = vld [vmem:[#allocation5 + $0x268] sm:$0xff]  ;;  %249 = vmatpush.msra.mxu1 %v160_v46  ;;  %289 = vmatpush.msra.mxu3 %v161_v47  ;;  %v118_v24 = vld [vmem:[#allocation5 + $0x130] sm:$0xff] }
  0x2e   :  { %v88_v52 = vld [vmem:[#allocation5 + $0x40] sm:$0xff]  ;;  %v89_v53 = vld [vmem:[#allocation5 + $0x48] sm:$0xff]  ;;  %230 = vmatpush.msra.mxu0 %v92_v48  ;;  %270 = vmatpush.msra.mxu2 %v93_v49  ;;  %v186_v25 = vld [vmem:[#allocation5 + $0x350] sm:$0xff] }
  0x2f   :  { %v152_v54 = vld [vmem:[#allocation5 + $0x240] sm:$0xff]  ;;  %v153_v55 = vld [vmem:[#allocation5 + $0x248] sm:$0xff]  ;;  %250 = vmatpush.msra.mxu1 %v156_v50  ;;  %290 = vmatpush.msra.mxu3 %v157_v51  ;;  %v119_v26 = vld [vmem:[#allocation5 + $0x138] sm:$0xff] }
  0x30   :  { %v84_v56 = vld [vmem:[#allocation5 + $0x20] sm:$0xff]  ;;  %v85_v57 = vld [vmem:[#allocation5 + $0x28] sm:$0xff]  ;;  %231 = vmatpush.msra.mxu0 %v88_v52  ;;  %271 = vmatpush.msra.mxu2 %v89_v53  ;;  %v187_v27 = vld [vmem:[#allocation5 + $0x358] sm:$0xff] }
  0x31   :  { %v148_v58 = vld [vmem:[#allocation5 + $0x220] sm:$0xff]  ;;  %v149_v59 = vld [vmem:[#allocation5 + $0x228] sm:$0xff]  ;;  %251 = vmatpush.msra.mxu1 %v152_v54  ;;  %291 = vmatpush.msra.mxu3 %v153_v55  ;;  %v114_v28 = vld [vmem:[#allocation5 + $0x110] sm:$0xff] }
  0x32   :  { %v80_v60 = vld [vmem:[#allocation5] sm:$0xff]  ;;  %v81_v61 = vld [vmem:[#allocation5 + $0x8] sm:$0xff]  ;;  %232 = vmatpush.msra.mxu0 %v84_v56  ;;  %272 = vmatpush.msra.mxu2 %v85_v57  ;;  %v182_v29 = vld [vmem:[#allocation5 + $0x330] sm:$0xff] }
  0x33   :  { %252 = vmatpush.msra.mxu1 %v148_v58  ;;  %292 = vmatpush.msra.mxu3 %v149_v59  ;;  %v144_v0 = vld [vmem:[#allocation5 + $0x200] sm:$0xff]  ;;  %v145_v2 = vld [vmem:[#allocation5 + $0x208] sm:$0xff]  ;;  %v115_v30 = vld [vmem:[#allocation5 + $0x118] sm:$0xff] }
  0x34   :  { %233 = vmatpush.msra.mxu0 %v80_v60  ;;  %273 = vmatpush.msra.mxu2 %v81_v61  ;;  %v183_v31 = vld [vmem:[#allocation5 + $0x338] sm:$0xff]  ;;  %v110_v32 = vld [vmem:[#allocation5 + $0xf0] sm:$0xff] }
  0x35   :  { %253 = vmatpush.msra.mxu1 %v144_v0  ;;  %274 = vmatmul.f32.vlgmr.msra.gmra.mxu2 %v710_v1  ;;  %v178_v33 = vld [vmem:[#allocation5 + $0x310] sm:$0xff]  ;;  %v111_v34 = vld [vmem:[#allocation5 + $0xf8] sm:$0xff] }
  0x36   :  { %298 = vmatpush.msrb.mxu0 %v142_v62  ;;  %338 = vmatpush.msrb.mxu2 %v143_v63  ;;  %v179_v35 = vld [vmem:[#allocation5 + $0x318] sm:$0xff]  ;;  %v106_v36 = vld [vmem:[#allocation5 + $0xd0] sm:$0xff] }
  0x37   :  { %293 = vmatpush.msra.mxu3 %v145_v2  ;;  %318 = vmatpush.msrb.mxu1 %v206_v4  ;;  %v174_v37 = vld [vmem:[#allocation5 + $0x2f0] sm:$0xff]  ;;  %v107_v38 = vld [vmem:[#allocation5 + $0xd8] sm:$0xff] }
  0x38   :  { %299 = vmatpush.msrb.mxu0 %v138_v3  ;;  %339 = vmatpush.msrb.mxu2 %v139_v5  ;;  %v175_v39 = vld [vmem:[#allocation5 + $0x2f8] sm:$0xff]  ;;  %v102_v40 = vld [vmem:[#allocation5 + $0xb0] sm:$0xff]  ;;  %v208_v3 = vld [vmem:[#allocation7] sm:$0xf] }
  0x39   :  { %358 = vmatpush.msrb.mxu3 %v207_v6  ;;  %319 = vmatpush.msrb.mxu1 %v202_v9  ;;  %v170_v41 = vld [vmem:[#allocation5 + $0x2d0] sm:$0xff]  ;;  %v103_v42 = vld [vmem:[#allocation5 + $0xb8] sm:$0xff]  ;;  %v211_v4 = vperm.slane %v208_v3, 1  ;;  %v210_v5 = vperm.slane %v208_v3, 0 }
  0x3a   :  { %300 = vmatpush.msrb.mxu0 %v134_v7  ;;  %294 = vmatmul.f32.vlgmr.msra.gmra.mxu3 %v713_v8  ;;  %v171_v43 = vld [vmem:[#allocation5 + $0x2d8] sm:$0xff]  ;;  %v98_v44 = vld [vmem:[#allocation5 + $0x90] sm:$0xff] }
  0x3b   :  { %340 = vmatpush.msrb.mxu2 %v135_v10  ;;  %359 = vmatpush.msrb.mxu3 %v203_v11  ;;  %v166_v45 = vld [vmem:[#allocation5 + $0x2b0] sm:$0xff]  ;;  %v99_v46 = vld [vmem:[#allocation5 + $0x98] sm:$0xff] }
  0x3c   :  { %301 = vmatpush.msrb.mxu0 %v130_v12  ;;  %320 = vmatpush.msrb.mxu1 %v198_v13  ;;  %v167_v47 = vld [vmem:[#allocation5 + $0x2b8] sm:$0xff]  ;;  %v94_v48 = vld [vmem:[#allocation5 + $0x70] sm:$0xff] }
  0x3d   :  { %341 = vmatpush.msrb.mxu2 %v131_v14  ;;  %360 = vmatpush.msrb.mxu3 %v199_v15  ;;  %v162_v49 = vld [vmem:[#allocation5 + $0x290] sm:$0xff]  ;;  %v95_v50 = vld [vmem:[#allocation5 + $0x78] sm:$0xff] }
  0x3e   :  { %234 = vmatmul.f32.vlgmr.msra.gmra.mxu0 %v710_v1  ;;  %321 = vmatpush.msrb.mxu1 %v194_v16  ;;  %v163_v51 = vld [vmem:[#allocation5 + $0x298] sm:$0xff]  ;;  %v90_v52 = vld [vmem:[#allocation5 + $0x50] sm:$0xff] }
  0x3f   :  { %302 = vmatpush.msrb.mxu0 %v126_v17  ;;  %342 = vmatpush.msrb.mxu2 %v127_v18  ;;  %v158_v53 = vld [vmem:[#allocation5 + $0x270] sm:$0xff]  ;;  %v91_v54 = vld [vmem:[#allocation5 + $0x58] sm:$0xff] }
  0x40   :  { %361 = vmatpush.msrb.mxu3 %v195_v19  ;;  %254 = vmatmul.f32.vlgmr.msra.gmra.mxu1 %v713_v8  ;;  %v159_v55 = vld [vmem:[#allocation5 + $0x278] sm:$0xff]  ;;  %v86_v56 = vld [vmem:[#allocation5 + $0x30] sm:$0xff] }
  0x41   :  { %303 = vmatpush.msrb.mxu0 %v122_v20  ;;  %322 = vmatpush.msrb.mxu1 %v190_v21  ;;  %v154_v57 = vld [vmem:[#allocation5 + $0x250] sm:$0xff]  ;;  %v87_v58 = vld [vmem:[#allocation5 + $0x38] sm:$0xff]  ;;  %v212_v20 = vperm.slane %v208_v3, 2 }
  0x42   :  { %343 = vmatpush.msrb.mxu2 %v123_v22  ;;  %362 = vmatpush.msrb.mxu3 %v191_v23  ;;  %v155_v59 = vld [vmem:[#allocation5 + $0x258] sm:$0xff]  ;;  %v82_v60 = vld [vmem:[#allocation5 + $0x10] sm:$0xff] }
  0x43   :  { %304 = vmatpush.msrb.mxu0 %v118_v24  ;;  %323 = vmatpush.msrb.mxu1 %v186_v25  ;;  %v150_v61 = vld [vmem:[#allocation5 + $0x230] sm:$0xff]  ;;  %v83_v62 = vld [vmem:[#allocation5 + $0x18] sm:$0xff] }
  0x44   :  { %344 = vmatpush.msrb.mxu2 %v119_v26  ;;  %363 = vmatpush.msrb.mxu3 %v187_v27  ;;  %v151_v63 = vld [vmem:[#allocation5 + $0x238] sm:$0xff]  ;;  %v146_v0 = vld [vmem:[#allocation5 + $0x210] sm:$0xff] }
  0x45   :  { %305 = vmatpush.msrb.mxu0 %v114_v28  ;;  %324 = vmatpush.msrb.mxu1 %v182_v29  ;;  %v147_v2 = vld [vmem:[#allocation5 + $0x218] sm:$0xff] }
  0x46   :  { %345 = vmatpush.msrb.mxu2 %v115_v30  ;;  %364 = vmatpush.msrb.mxu3 %v183_v31  ;;  %v213_v30 = vperm.slane %v208_v3, 3 }
  0x47   :  { %306 = vmatpush.msrb.mxu0 %v110_v32  ;;  %325 = vmatpush.msrb.mxu1 %v178_v33 }
  0x48   :  { %346 = vmatpush.msrb.mxu2 %v111_v34  ;;  %365 = vmatpush.msrb.mxu3 %v179_v35 }
  0x49   :  { %307 = vmatpush.msrb.mxu0 %v106_v36  ;;  %326 = vmatpush.msrb.mxu1 %v174_v37 }
  0x4a   :  { %347 = vmatpush.msrb.mxu2 %v107_v38  ;;  %366 = vmatpush.msrb.mxu3 %v175_v39 }
  0x4b   :  { %308 = vmatpush.msrb.mxu0 %v102_v40  ;;  %327 = vmatpush.msrb.mxu1 %v170_v41 }
  0x4c   :  { %348 = vmatpush.msrb.mxu2 %v103_v42  ;;  %367 = vmatpush.msrb.mxu3 %v171_v43 }
  0x4d   :  { %309 = vmatpush.msrb.mxu0 %v98_v44  ;;  %328 = vmatpush.msrb.mxu1 %v166_v45 }
  0x4e   :  { %349 = vmatpush.msrb.mxu2 %v99_v46  ;;  %368 = vmatpush.msrb.mxu3 %v167_v47 }
  0x4f   :  { %310 = vmatpush.msrb.mxu0 %v94_v48  ;;  %329 = vmatpush.msrb.mxu1 %v162_v49 }
  0x50   :  { %350 = vmatpush.msrb.mxu2 %v95_v50  ;;  %369 = vmatpush.msrb.mxu3 %v163_v51 }
  0x51   :  { %311 = vmatpush.msrb.mxu0 %v90_v52  ;;  %330 = vmatpush.msrb.mxu1 %v158_v53  ;;  %v436_v52 = vld [vmem:[#allocation8] sm:$0xff] }
  0x52   :  { %351 = vmatpush.msrb.mxu2 %v91_v54  ;;  %370 = vmatpush.msrb.mxu3 %v159_v55 }
  0x53   :  { %312 = vmatpush.msrb.mxu0 %v86_v56  ;;  %331 = vmatpush.msrb.mxu1 %v154_v57 }
  0x54   :  { %352 = vmatpush.msrb.mxu2 %v87_v58  ;;  %371 = vmatpush.msrb.mxu3 %v155_v59 }
  0x55   :  { %313 = vmatpush.msrb.mxu0 %v82_v60  ;;  %332 = vmatpush.msrb.mxu1 %v150_v61 }
  0x56   :  { %353 = vmatpush.msrb.mxu2 %v83_v62  ;;  %372 = vmatpush.msrb.mxu3 %v151_v63 }
  0x57   :  { %314 = vmatmul.f32.vlgmr.msrb.gmra.mxu0 %v710_v1  ;;  %354 = vmatmul.f32.vlgmr.msrb.gmra.mxu2 %v710_v1 }
  0x58   :  { %333 = vmatpush.msrb.mxu1 %v146_v0  ;;  %373 = vmatpush.msrb.mxu3 %v147_v2 }
  0x59   :  { %334 = vmatmul.f32.vlgmr.msrb.gmra.mxu1 %v713_v8  ;;  %374 = vmatmul.f32.vlgmr.msrb.gmra.mxu3 %v713_v8 }
  0xb8   :  { %v275_v6 = vpop.f32.mrf.mxu2 }
  0xb9   :  { %v276_v7 = vadd.f32 %v275_v6, %v211_v4 }
  0xbb   :  { %v235_v9 = vpop.f32.mrf.mxu0 }
  0xbc   :  { %v236_v10 = vadd.f32 %v235_v9, %v210_v5 }
  0xbd   :  { %v255_v11 = vpop.f32.mrf.mxu1  ;;  %v295_v12 = vpop.f32.mrf.mxu3 }
  0xbe   :  { %v256_v13 = vadd.f32 %v255_v11, %v236_v10  ;;  %v296_v14 = vadd.f32 %v295_v12, %v276_v7 }
  0xc0   :  { %v479_v15 = vmul.f32 -1.442695, %v256_v13  ;;  %v480_v16 = vmul.f32 -1.442695, %v296_v14 }
  0xc2   :  { %490 = vpow2.f32 %v479_v15 }
  0xc3   :  { %492 = vpow2.f32 %v480_v16 }
  0xc8   :  { %v491_v1 = vpop.eup %490 }
  0xc9   :  { %v493_v17 = vpop.eup %492  ;;  %v381_v18 = vadd.f32 1.0, %v491_v1 }
  0xca   :  { %v400_v19 = vadd.f32 1.0, %v493_v17 }
  0xcb   :  { %494 = vrcp.f32 %v381_v18  ;;  %vm387_vm2 = vweird.f32 %v381_v18  ;;  %v393_v42 = vand.u32 2147483648, %v381_v18  ;;  %v391_v44 = vand.u32 2147483647, %v381_v18 }
  0xcc   :  { %496 = vrcp.f32 %v400_v19  ;;  %vm406_vm0 = vweird.f32 %v400_v19  ;;  %v412_v35 = vand.u32 2147483648, %v400_v19  ;;  %v410_v39 = vand.u32 2147483647, %v400_v19 }
  0xcd   :  { %v394_v48 = vor.u32 1.1754944e-38, %v393_v42  ;;  %vm392_vm7 = vcmp.eq.f32.partialorder %v391_v44, 8.507059e+37 }
  0xce   :  { %v413_v45 = vor.u32 1.1754944e-38, %v412_v35  ;;  %vm411_vm6 = vcmp.eq.f32.partialorder %v410_v39, 8.507059e+37 }
  0xd1   :  { %v495_v8 = vpop.eup %494 }
  0xd2   :  { %v497_v21 = vpop.eup %496  ;;  %v383_v22 = vmul.f32 %v495_v8, %v381_v18  ;;  %vm388_vm3 = vweird.f32 %v495_v8 }
  0xd3   :  { %v402_v23 = vmul.f32 %v497_v21, %v400_v19  ;;  %vm407_vm1 = vweird.f32 %v497_v21  ;;  %vm389_vm5 = vmor %vm387_vm2, %vm388_vm3 }
  0xd4   :  { %v315_v24 = vpop.f32.mrf.mxu0  ;;  %v384_v27 = vsub.f32 1.0, %v383_v22  ;;  %vm722_vm4 = vmor %vm406_vm0, %vm407_vm1 }
  0xd5   :  { %v403_v25 = vsub.f32 1.0, %v402_v23  ;;  %v316_v26 = vadd.f32 %v315_v24, %v212_v20 }
  0xd6   :  { %v335_v28 = vpop.f32.mrf.mxu1  ;;  %v385_v34 = vmul.f32 %v495_v8, %v384_v27 }
  0xd7   :  { %v336_v29 = vadd.f32 %v335_v28, %v316_v26  ;;  %v404_v31 = vmul.f32 %v497_v21, %v403_v25 }
  0xd8   :  { %v386_v43 = vadd.f32 %v495_v8, %v385_v34 }
  0xd9   :  { %v481_v32 = vmul.f32 -1.442695, %v336_v29  ;;  %v405_v38 = vadd.f32 %v497_v21, %v404_v31 }
  0xda   :  { %v355_v33 = vpop.f32.mrf.mxu2  ;;  %v390_v50 = vsel %vm389_vm5, %v495_v8, %v386_v43 }
  0xdb   :  { %498 = vpow2.f32 %v481_v32  ;;  %v356_v36 = vadd.f32 %v355_v33, %v213_v30  ;;  %v409_v46 = vsel %vm722_vm4, %v497_v21, %v405_v38  ;;  %v395_v54 = vsel %vm392_vm7, %v394_v48, %v390_v50 }
  0xdc   :  { %v375_v37 = vpop.f32.mrf.mxu3  ;;  %v414_v51 = vsel %vm411_vm6, %v413_v45, %v409_v46 }
  0xdd   :  { %v376_v41 = vadd.f32 %v375_v37, %v356_v36  ;;  %v437_v55 = vmul.f32 %v436_v52, %v414_v51 }
  0xdf   :  { %500 = vtanh.f32 %v376_v41 }
  0xe1   :  { %v499_v47 = vpop.eup %498 }
  0xe2   :  { %v419_v49 = vadd.f32 1.0, %v499_v47 }
  0xe4   :  { %502 = vrcp.f32 %v419_v49  ;;  %v431_v61 = vand.u32 2147483648, %v419_v49  ;;  %v429_v63 = vand.u32 2147483647, %v419_v49  ;;  %vm425_vm9 = vweird.f32 %v419_v49 }
  0xe5   :  { %v501_v53 = vpop.eup %500 }
  0xe6   :  { %v438_v56 = vmul.f32 %v501_v53, %v395_v54  ;;  %v432_v2 = vor.u32 1.1754944e-38, %v431_v61  ;;  %vm430_vm11 = vcmp.eq.f32.partialorder %v429_v63, 8.507059e+37 }
  0xe8   :  { %v439_v57 = vadd.f32 %v438_v56, %v437_v55 }
  0xea   :  { %v503_v58 = vpop.eup %502  ;;  %443 = vst [vmem:[#allocation11] sm:$0xff] %v439_v57  ;;  %504 = vtanh.f32 %v439_v57 }
  0xeb   :  { %v421_v59 = vmul.f32 %v503_v58, %v419_v49  ;;  %465 = dma.vmem_to_hbm [thread:$0]  %s461_s3, 128, %s463_s15, [#allocation12]   ;;  %vm426_vm8 = vweird.f32 %v503_v58 }
  0xec   :  { %vm427_vm10 = vmor %vm425_vm9, %vm426_vm8 }
  0xed   :  { %v422_v60 = vsub.f32 1.0, %v421_v59 }
  0xef   :  { %v423_v62 = vmul.f32 %v503_v58, %v422_v60 }
  0xf0   :  { %v505_v4 = vpop.eup %504 }
  0xf1   :  { %v424_v0 = vadd.f32 %v503_v58, %v423_v62 }
  0xf3   :  { %v428_v3 = vsel %vm427_vm10, %v503_v58, %v424_v0 }
  0xf4   :  { %v433_v5 = vsel %vm430_vm11, %v432_v2, %v428_v3 }
  0xf5   :  { %v441_v6 = vmul.f32 %v505_v4, %v433_v5 }
  0xf7   :  { %442 = vst [vmem:[#allocation10] sm:$0xff] %v441_v6 }
  0xf8   :  { %454 = dma.vmem_to_hbm [thread:$0]  %s450_s16, 128, %s452_s19, [#allocation4]  }
  0xf9   :  { %656 = dma.done.wait [#allocation4], 128  }
  0xfa   :  { %657 = vsyncadd [#allocation4], 4294967168 }
  0xfb   :  { %658 = dma.done.wait [#allocation12], 128  }
  0xfc   :  { %659 = vsyncadd [#allocation12], 4294967168 }
  0xfd   :  { %474 = vsyncpa [#allocation3], 1 }
  0xfe   :  { %475 = vsyncpa [#allocation6], 1 }
  0xff   :  { %476 = vsyncpa [#allocation9], 1 }
 0x100   :  { %477 = vsyncpa [#allocation4], 1 }
 0x101   :  { %478 = vsyncpa [#allocation12], 1 }

</bundles_post_ra>
